<compile_context>
chip_gen: v6e
topology: v6e:2x2x1
jax: 0.10.0
libtpu: 0.0.40
codegen_flags: <defaults>
</compile_context>

<pallas_src>
import math

import jax
import jax.numpy as jnp
from jax import lax
from jax.experimental import pallas as pl
from jax.experimental.pallas import tpu as pltpu

MARGIN = 0.5
ALPHA = 0.5
TEMPERATURE_INIT = 1.0  # nn.Parameter(torch.ones(1) * temperature)
_LN2 = math.log(2.0)


def _make_crl_kernel(tc):
    """Kernel with the C tile width baked in as a closure constant."""
    n_lane_folds = tc // 128

    def kernel(temp_ref, logits_ref, labels_ref, sim_ref, lm_ref, bce_ref):
        # temp_ref:   SMEM (1,)      f32   scalar-prefetched temperature
        # logits_ref: VMEM (B, tc)   f32
        # labels_ref: VMEM (B, tc)   bf16  (0/1 labels, exact in bf16)
        # sim_ref:    VMEM (B, B)    f32   X X^T partial gram (out, resident over c)
        # lm_ref:     VMEM (B, B)    f32   Y Y^T partial gram (out, resident over c)
        # bce_ref:    VMEM (B, 128)  f32   lane-wise BCE partial sums (out)
        c = pl.program_id(1)

        @pl.when(c == 0)
        def _init():
            sim_ref[...] = jnp.zeros_like(sim_ref)
            lm_ref[...] = jnp.zeros_like(lm_ref)
            bce_ref[...] = jnp.zeros_like(bce_ref)

        # One scalar divide per step, then a VPU multiply per tile.
        inv_t = 1.0 / temp_ref[0]
        x = logits_ref[...] * inv_t              # scaled logits (f32)
        y_bf = labels_ref[...]                   # bf16 labels for the MXU
        y = y_bf.astype(jnp.float32)

        # Numerically-stable BCEWithLogits (sum here, 'mean' in the wrapper):
        #   max(x,0) - x*y + log(1 + exp(-|x|))
        # Zero-padded lanes (x=0, y=0) contribute exactly log(2) each; they are
        # corrected analytically in the wrapper instead of masking every step.
        # TODO(synk): a bf16 softplus would ~2x the EUP throughput on v6e/v7x;
        # kept in the known-good f32 form for fidelity and v5e (no bf16 EUP).
        bce = jnp.maximum(x, 0.0) - x * y + jnp.log(1.0 + jnp.exp(-jnp.abs(x)))

        # Lane-tile fold (B, tc) -> (B, 128): pure VPU adds on aligned vreg
        # slices - no per-step cross-lane XLU reduce, no SMEM scalar RMW.
        acc = bce[:, 0:128]
        for j in range(1, n_lane_folds):
            acc = acc + bce[:, j * 128:(j + 1) * 128]
        bce_ref[...] += acc

        # Partial grams over this C tile (zero padding contributes zero).
        # Similarity gram via bf16 hi/lo split: 3 single-pass bf16 MXU matmuls
        # with f32 accumulation ~ f32 fidelity, far fewer passes than f32.
        dims = (((1,), (1,)), ((), ()))
        x_hi = x.astype(jnp.bfloat16)
        x_lo = (x - x_hi.astype(jnp.float32)).astype(jnp.bfloat16)
        sim_ref[...] += (
            lax.dot_general(x_hi, x_hi, dims, preferred_element_type=jnp.float32)
            + lax.dot_general(x_hi, x_lo, dims, preferred_element_type=jnp.float32)
            + lax.dot_general(x_lo, x_hi, dims, preferred_element_type=jnp.float32)
        )
        # Label gram: exact in bf16 for 0/1 labels with f32 accumulation.
        # TODO(synk): int8 (v5e/v6e) / fp8 (v7x) labels would halve label HBM
        # traffic; kept bf16 for a single generation-independent lowering.
        lm_ref[...] += lax.dot_general(y_bf, y_bf, dims,
                                       preferred_element_type=jnp.float32)

    return kernel


def _vmem_budget_bytes():
    """Generation-aware VMEM budget with headroom for Mosaic internal scratch."""
    try:
        cap = int(pltpu.get_tpu_info().vmem_capacity_bytes)
    except Exception:
        kind = ""
        try:
            kind = jax.devices()[0].device_kind.lower()
        except Exception:
            pass
        cap = (64 << 20) if "7" in kind else (128 << 20)
    # v7x (64 MiB physical per TC) -> ~56 MiB; v5e/v6e (128 MiB) -> 100 MiB.
    return int(min(cap - (8 << 20), 100 << 20))


def _choose_tile_c(B, c_pad128, budget):
    """Largest 128-multiple lane tile that fits the generation budget."""
    fixed = 2 * B * B * 4 + B * 128 * 4          # resident output/accumulator blocks
    avail = budget - fixed - (2 << 20)           # compiler / pipeline margin
    per_col = 2 * B * (4 + 2)                    # 2 pipeline bufs x (f32 logits + bf16 labels)
    tc = (max(avail, 0) // per_col) // 128 * 128
    return int(max(128, min(tc, c_pad128, 8192)))


def _vmem_limit_bytes(B, tc, budget):
    need = 2 * B * tc * (4 + 2) + 2 * B * B * 4 + B * 128 * 4 + (4 << 20)
    return int(min(max(need, 16 << 20), budget))


def calibrated_ranking_loss(logits, labels, temperature, *, tile_c=None):
    """logits, labels: (B, C); temperature: (1,). Returns scalar loss."""
    logits = logits.astype(jnp.float32)
    labels = labels.astype(jnp.float32)          # hard 0/1 labels assumed
    temperature = temperature.astype(jnp.float32).reshape((1,))
    B, C = logits.shape

    if B <= 1:
        # Degenerate path of the PyTorch module: BCE term only (plain-JAX glue).
        x = logits / temperature[0]
        bce = jnp.maximum(x, 0.0) - x * labels + jnp.log(1.0 + jnp.exp(-jnp.abs(x)))
        return jnp.mean(bce)

    budget = _vmem_budget_bytes()
    min_need = 2 * B * 128 * 6 + 2 * B * B * 4 + B * 128 * 4
    if min_need + (2 << 20) > budget:
        # TODO(synk): (i, j) tiling of the (B,B) gram accumulators for huge B.
        raise ValueError(f"batch={B} too large for single-block (B,B) gram accumulators")

    c_pad128 = ((C + 127) // 128) * 128
    if tile_c is None:
        tc = _choose_tile_c(B, c_pad128, budget)
    else:
        assert tile_c % 128 == 0, "tile_c must be a multiple of 128 lanes"
        tc = int(min(tile_c, c_pad128))

    n_c = -(-C // tc)
    # 2-way split of the C reduction: parallel across the two v7x TensorCores,
    # harmless serial outer loop on single-core chips.
    n_split = 2 if n_c >= 2 else 1
    n_c = -(-n_c // n_split) * n_split
    n_steps = n_c // n_split
    c_pad = n_c * tc
    n_pad = c_pad - C

    if n_pad:
        # Zero padding contributes nothing to either gram; its BCE contribution
        # (exactly log(2) per padded element) is subtracted analytically below.
        logits = jnp.pad(logits, ((0, 0), (0, n_pad)))
        labels = jnp.pad(labels, ((0, 0), (0, n_pad)))
    labels_bf16 = labels.astype(jnp.bfloat16)     # exact for 0/1 labels

    kernel = _make_crl_kernel(tc)

    grid_spec = pltpu.PrefetchScalarGridSpec(
        num_scalar_prefetch=1,                    # temperature -> SMEM
        grid=(n_split, n_steps),
        in_specs=[
            pl.BlockSpec((B, tc), lambda s, c, temp: (0, s * n_steps + c)),  # logits f32
            pl.BlockSpec((B, tc), lambda s, c, temp: (0, s * n_steps + c)),  # labels bf16
        ],
        out_specs=(
            pl.BlockSpec((None, B, B), lambda s, c, temp: (s, 0, 0)),    # sim partials
            pl.BlockSpec((None, B, B), lambda s, c, temp: (s, 0, 0)),    # label-gram partials
            pl.BlockSpec((None, B, 128), lambda s, c, temp: (s, 0, 0)),  # BCE lane partials
        ),
    )

    out_shape = (
        jax.ShapeDtypeStruct((n_split, B, B), jnp.float32),
        jax.ShapeDtypeStruct((n_split, B, B), jnp.float32),
        jax.ShapeDtypeStruct((n_split, B, 128), jnp.float32),
    )

    cost = pl.CostEstimate(
        flops=2 * 4 * B * B * c_pad + 12 * B * c_pad,
        transcendentals=2 * B * c_pad,
        bytes_accessed=B * c_pad * (4 + 2) + n_split * (2 * B * B + B * 128) * 4 + 4,
    )

    sim_p, lm_p, bce_p = pl.pallas_call(
        kernel,
        out_shape=out_shape,
        grid_spec=grid_spec,
        compiler_params=pltpu.CompilerParams(
            dimension_semantics=("parallel", "arbitrary"),
            vmem_limit_bytes=_vmem_limit_bytes(B, tc, budget),
        ),
        cost_estimate=cost,
    )(temperature, logits, labels_bf16)

    # Tiny finalize on (B,B) in plain JAX: combine per-core partials, apply the
    # analytic padding correction, and compute the ranking / BCE terms.
    sim = jnp.sum(sim_p, axis=0)
    lm = jnp.sum(lm_p, axis=0)
    bce_sum = jnp.sum(bce_p) - float(B * n_pad) * _LN2
    cls_loss = bce_sum / float(B * C)

    pos_mask = lm > 0.0                           # exact: lm is integer-valued
    pos_cnt = jnp.sum(pos_mask.astype(jnp.float32))
    pos_sum = jnp.sum(jnp.where(pos_mask, sim, 0.0))
    neg_cnt = float(B * B) - pos_cnt              # lm >= 0 for 0/1 labels
    neg_sum = jnp.sum(sim) - pos_sum

    pos_mean = pos_sum / jnp.maximum(pos_cnt, 1.0)
    neg_mean = neg_sum / jnp.maximum(neg_cnt, 1.0)
    ranking = jnp.maximum(MARGIN - pos_mean + neg_mean, 0.0)
    ranking = jnp.where(jnp.logical_and(pos_cnt > 0.0, neg_cnt > 0.0), ranking, 0.0)
    return ALPHA * cls_loss + (1.0 - ALPHA) * ranking


def _reference(logits, labels, temperature):
    """Pure-JAX reference mirroring the PyTorch forward, for sanity checking."""
    x = logits / temperature[0]
    bce = jnp.maximum(x, 0.0) - x * labels + jnp.log(1.0 + jnp.exp(-jnp.abs(x)))
    cls_loss = jnp.mean(bce)
    hp = jax.lax.Precision.HIGHEST
    sim = jnp.dot(x, x.T, precision=hp)
    lm = jnp.dot(labels, labels.T, precision=hp)
    pos_mask = lm > 0
    neg_mask = lm == 0
    pos_cnt = jnp.sum(pos_mask)
    neg_cnt = jnp.sum(neg_mask)
    pos_mean = jnp.sum(jnp.where(pos_mask, sim, 0.0)) / jnp.maximum(pos_cnt, 1)
    neg_mean = jnp.sum(jnp.where(neg_mask, sim, 0.0)) / jnp.maximum(neg_cnt, 1)
    ranking = jnp.where((pos_cnt > 0) & (neg_cnt > 0),
                        jnp.maximum(MARGIN - pos_mean + neg_mean, 0.0), 0.0)
    return ALPHA * cls_loss + (1.0 - ALPHA) * ranking


if __name__ == "__main__":
    key = jax.random.PRNGKey(0)
    k1, k2, k3, k4, k5, k6 = jax.random.split(key, 6)
    temperature = jnp.ones((1,), dtype=jnp.float32) * TEMPERATURE_INIT

    # Case 1: small multi-label problem (single C tile, n_split = 1 path).
    B, C = 8, 32
    logits = jax.random.normal(k1, (B, C), dtype=jnp.float32)
    labels = jax.random.bernoulli(k2, 0.15, (B, C)).astype(jnp.float32)
    loss = jax.block_until_ready(calibrated_ranking_loss(logits, labels, temperature))
    ref = _reference(logits, labels, temperature)
    assert jnp.allclose(loss, ref, rtol=1e-3, atol=1e-3), (loss, ref)

    # Case 2: non-multiple-of-128 C with a forced small tile -> multi-step C
    # grid, 2-way core split, and the analytic zero-padding correction
    # (partial tile + a whole padded tile to make n_c even).
    B2, C2 = 16, 300
    logits2 = jax.random.normal(k3, (B2, C2), dtype=jnp.float32)
    labels2 = jax.random.bernoulli(k4, 0.2, (B2, C2)).astype(jnp.float32)
    loss2 = jax.block_until_ready(
        calibrated_ranking_loss(logits2, labels2, temperature, tile_c=128))
    ref2 = _reference(logits2, labels2, temperature)
    assert jnp.allclose(loss2, ref2, rtol=1e-3, atol=1e-3), (loss2, ref2)

    # Case 3: wider C with auto tile selection (exercises the lane-tile fold).
    B3, C3 = 24, 1024
    logits3 = jax.random.normal(k5, (B3, C3), dtype=jnp.float32)
    labels3 = jax.random.bernoulli(k6, 0.1, (B3, C3)).astype(jnp.float32)
    loss3 = jax.block_until_ready(calibrated_ranking_loss(logits3, labels3, temperature))
    ref3 = _reference(logits3, labels3, temperature)
    assert jnp.allclose(loss3, ref3, rtol=1e-3, atol=1e-3), (loss3, ref3)

    print("KERNEL_OK")
</pallas_src>

<mosaic_0001>
module attributes {stable_mosaic.version = 11 : i64} {
  func.func @kernel(%arg0: i32, %arg1: i32, %arg2: memref<1xf32, #tpu.memory_space<smem>>, %arg3: memref<8x128xf32, #tpu.memory_space<vmem>>, %arg4: memref<8x128xbf16, #tpu.memory_space<vmem>>, %arg5: memref<1x8x8xf32, #tpu.memory_space<vmem>>, %arg6: memref<1x8x8xf32, #tpu.memory_space<vmem>>, %arg7: memref<1x8x128xf32, #tpu.memory_space<vmem>>) attributes {dimension_semantics = [#tpu.dimension_semantics<parallel>, #tpu.dimension_semantics<arbitrary>], iteration_bounds = array<i64: 1, 1>, scalar_prefetch = 1 : i64, scratch_operands = 0 : i64, tpu.core_type = #tpu.core_type<tc>, window_params = [{transform_indices = @transform_0, window_bounds = array<i64: 8, 128>}, {transform_indices = @transform_1, window_bounds = array<i64: 8, 128>}, {transform_indices = @transform_2, window_bounds = array<i64: 1, 8, 8>}, {transform_indices = @transform_3, window_bounds = array<i64: 1, 8, 8>}, {transform_indices = @transform_4, window_bounds = array<i64: 1, 8, 128>}]} {
    %c0_i32 = arith.constant 0 : i32
    %0 = arith.cmpi eq, %arg1, %c0_i32 : i32
    %1 = arith.extui %0 : i1 to i32
    %c0_i32_0 = arith.constant 0 : i32
    %2 = arith.cmpi ne, %1, %c0_i32_0 : i32
    scf.if %2 {
      %cst_30 = arith.constant 0.000000e+00 : f32
      %50 = vector.broadcast %cst_30 : f32 to vector<8x8xf32>
      %c0_31 = arith.constant 0 : index
      %c0_32 = arith.constant 0 : index
      %c0_33 = arith.constant 0 : index
      %51 = vector.load %arg5[%c0_31, %c0_32, %c0_33] : memref<1x8x8xf32, #tpu.memory_space<vmem>>, vector<1x8x8xf32>
      %52 = vector.shape_cast %51 : vector<1x8x8xf32> to vector<8x8xf32>
      %53 = vector.shape_cast %50 : vector<8x8xf32> to vector<1x8x8xf32>
      tpu.vector_store %arg5[%c0_31, %c0_32, %c0_33], %53 {strides = array<i32>} : memref<1x8x8xf32, #tpu.memory_space<vmem>>, vector<1x8x8xf32>,
      %cst_34 = arith.constant 0.000000e+00 : f32
      %54 = vector.broadcast %cst_34 : f32 to vector<8x8xf32>
      %c0_35 = arith.constant 0 : index
      %c0_36 = arith.constant 0 : index
      %c0_37 = arith.constant 0 : index
      %55 = vector.load %arg6[%c0_35, %c0_36, %c0_37] : memref<1x8x8xf32, #tpu.memory_space<vmem>>, vector<1x8x8xf32>
      %56 = vector.shape_cast %55 : vector<1x8x8xf32> to vector<8x8xf32>
      %57 = vector.shape_cast %54 : vector<8x8xf32> to vector<1x8x8xf32>
      tpu.vector_store %arg6[%c0_35, %c0_36, %c0_37], %57 {strides = array<i32>} : memref<1x8x8xf32, #tpu.memory_space<vmem>>, vector<1x8x8xf32>,
      %cst_38 = arith.constant 0.000000e+00 : f32
      %58 = vector.broadcast %cst_38 : f32 to vector<8x128xf32>
      %c0_39 = arith.constant 0 : index
      %c0_40 = arith.constant 0 : index
      %c0_41 = arith.constant 0 : index
      %59 = vector.load %arg7[%c0_39, %c0_40, %c0_41] : memref<1x8x128xf32, #tpu.memory_space<vmem>>, vector<1x8x128xf32>
      %60 = vector.shape_cast %59 : vector<1x8x128xf32> to vector<8x128xf32>
      %61 = vector.shape_cast %58 : vector<8x128xf32> to vector<1x8x128xf32>
      tpu.vector_store %arg7[%c0_39, %c0_40, %c0_41], %61 {strides = array<i32>} : memref<1x8x128xf32, #tpu.memory_space<vmem>>, vector<1x8x128xf32>,
    } else {
    }
    %c0 = arith.constant 0 : index
    %3 = memref.load %arg2[%c0] : memref<1xf32, #tpu.memory_space<smem>>
    %cst = arith.constant 1.000000e+00 : f32
    %4 = arith.divf %cst, %3 : f32
    %c0_1 = arith.constant 0 : index
    %c0_2 = arith.constant 0 : index
    %5 = vector.load %arg3[%c0_1, %c0_2] : memref<8x128xf32, #tpu.memory_space<vmem>>, vector<8x128xf32>
    %6 = vector.broadcast %4 : f32 to vector<8x128xf32>
    %7 = arith.mulf %5, %6 : vector<8x128xf32>
    %c0_3 = arith.constant 0 : index
    %c0_4 = arith.constant 0 : index
    %8 = vector.load %arg4[%c0_3, %c0_4] : memref<8x128xbf16, #tpu.memory_space<vmem>>, vector<8x128xbf16>
    %9 = arith.extf %8 : vector<8x128xbf16> to vector<8x128xf32>
    %cst_5 = arith.constant 0.000000e+00 : f32
    %10 = vector.broadcast %cst_5 : f32 to vector<8x128xf32>
    %11 = arith.maximumf %7, %10 : vector<8x128xf32>
    %12 = arith.mulf %7, %9 : vector<8x128xf32>
    %13 = arith.subf %11, %12 : vector<8x128xf32>
    %14 = math.absf %7 : vector<8x128xf32>
    %cst_6 = arith.constant 0.000000e+00 : f32
    %15 = vector.broadcast %cst_6 : f32 to vector<8x128xf32>
    %16 = arith.subf %15, %14 : vector<8x128xf32>
    %17 = math.exp %16 : vector<8x128xf32>
    %cst_7 = arith.constant 1.000000e+00 : f32
    %18 = vector.broadcast %cst_7 : f32 to vector<8x128xf32>
    %19 = arith.addf %18, %17 : vector<8x128xf32>
    %20 = math.log %19 : vector<8x128xf32>
    %21 = arith.addf %13, %20 : vector<8x128xf32>
    %c0_8 = arith.constant 0 : index
    %c0_9 = arith.constant 0 : index
    %c0_10 = arith.constant 0 : index
    %22 = vector.load %arg7[%c0_8, %c0_9, %c0_10] : memref<1x8x128xf32, #tpu.memory_space<vmem>>, vector<1x8x128xf32>
    %23 = vector.shape_cast %22 : vector<1x8x128xf32> to vector<8x128xf32>
    %24 = arith.addf %23, %21 : vector<8x128xf32>
    %c0_11 = arith.constant 0 : index
    %c0_12 = arith.constant 0 : index
    %c0_13 = arith.constant 0 : index
    %25 = vector.load %arg7[%c0_11, %c0_12, %c0_13] : memref<1x8x128xf32, #tpu.memory_space<vmem>>, vector<1x8x128xf32>
    %26 = vector.shape_cast %25 : vector<1x8x128xf32> to vector<8x128xf32>
    %27 = vector.shape_cast %24 : vector<8x128xf32> to vector<1x8x128xf32>
    tpu.vector_store %arg7[%c0_11, %c0_12, %c0_13], %27 {strides = array<i32>} : memref<1x8x128xf32, #tpu.memory_space<vmem>>, vector<1x8x128xf32>,
    %28 = arith.truncf %7 : vector<8x128xf32> to vector<8x128xbf16>
    %29 = arith.extf %28 : vector<8x128xbf16> to vector<8x128xf32>
    %30 = arith.subf %7, %29 : vector<8x128xf32>
    %31 = arith.truncf %30 : vector<8x128xf32> to vector<8x128xbf16>
    %c0_14 = arith.constant 0 : index
    %c0_15 = arith.constant 0 : index
    %c0_16 = arith.constant 0 : index
    %32 = vector.load %arg5[%c0_14, %c0_15, %c0_16] : memref<1x8x8xf32, #tpu.memory_space<vmem>>, vector<1x8x8xf32>
    %33 = vector.shape_cast %32 : vector<1x8x8xf32> to vector<8x8xf32>
    %cst_17 = arith.constant dense<0.000000e+00> : vector<8x8xf32>
    %34 = tpu.matmul %28, %28, %cst_17 {dimension_numbers = #tpu.dot_dimension_numbers<[1], [1], [0], [0], [0, 0, 1, 0], [], []>} : vector<8x128xbf16>, vector<8x128xbf16>, vector<8x8xf32> -> vector<8x8xf32>
    %cst_18 = arith.constant dense<0.000000e+00> : vector<8x8xf32>
    %35 = tpu.matmul %28, %31, %cst_18 {dimension_numbers = #tpu.dot_dimension_numbers<[1], [1], [0], [0], [0, 0, 1, 0], [], []>} : vector<8x128xbf16>, vector<8x128xbf16>, vector<8x8xf32> -> vector<8x8xf32>
    %36 = arith.addf %34, %35 : vector<8x8xf32>
    %cst_19 = arith.constant dense<0.000000e+00> : vector<8x8xf32>
    %37 = tpu.matmul %31, %28, %cst_19 {dimension_numbers = #tpu.dot_dimension_numbers<[1], [1], [0], [0], [0, 0, 1, 0], [], []>} : vector<8x128xbf16>, vector<8x128xbf16>, vector<8x8xf32> -> vector<8x8xf32>
    %38 = arith.addf %36, %37 : vector<8x8xf32>
    %39 = arith.addf %33, %38 : vector<8x8xf32>
    %c0_20 = arith.constant 0 : index
    %c0_21 = arith.constant 0 : index
    %c0_22 = arith.constant 0 : index
    %40 = vector.load %arg5[%c0_20, %c0_21, %c0_22] : memref<1x8x8xf32, #tpu.memory_space<vmem>>, vector<1x8x8xf32>
    %41 = vector.shape_cast %40 : vector<1x8x8xf32> to vector<8x8xf32>
    %42 = vector.shape_cast %39 : vector<8x8xf32> to vector<1x8x8xf32>
    tpu.vector_store %arg5[%c0_20, %c0_21, %c0_22], %42 {strides = array<i32>} : memref<1x8x8xf32, #tpu.memory_space<vmem>>, vector<1x8x8xf32>,
    %c0_23 = arith.constant 0 : index
    %c0_24 = arith.constant 0 : index
    %c0_25 = arith.constant 0 : index
    %43 = vector.load %arg6[%c0_23, %c0_24, %c0_25] : memref<1x8x8xf32, #tpu.memory_space<vmem>>, vector<1x8x8xf32>
    %44 = vector.shape_cast %43 : vector<1x8x8xf32> to vector<8x8xf32>
    %cst_26 = arith.constant dense<0.000000e+00> : vector<8x8xf32>
    %45 = tpu.matmul %8, %8, %cst_26 {dimension_numbers = #tpu.dot_dimension_numbers<[1], [1], [0], [0], [0, 0, 1, 0], [], []>} : vector<8x128xbf16>, vector<8x128xbf16>, vector<8x8xf32> -> vector<8x8xf32>
    %46 = arith.addf %44, %45 : vector<8x8xf32>
    %c0_27 = arith.constant 0 : index
    %c0_28 = arith.constant 0 : index
    %c0_29 = arith.constant 0 : index
    %47 = vector.load %arg6[%c0_27, %c0_28, %c0_29] : memref<1x8x8xf32, #tpu.memory_space<vmem>>, vector<1x8x8xf32>
    %48 = vector.shape_cast %47 : vector<1x8x8xf32> to vector<8x8xf32>
    %49 = vector.shape_cast %46 : vector<8x8xf32> to vector<1x8x8xf32>
    tpu.vector_store %arg6[%c0_27, %c0_28, %c0_29], %49 {strides = array<i32>} : memref<1x8x8xf32, #tpu.memory_space<vmem>>, vector<1x8x8xf32>,
    return
  }
  func.func @transform_0(%arg0: i32, %arg1: i32, %arg2: memref<1xf32, #tpu.memory_space<smem>>) -> (i32, i32) {
    %c1_i32 = arith.constant 1 : i32
    %0 = arith.muli %arg0, %c1_i32 : i32
    %1 = arith.addi %0, %arg1 : i32
    %c0_i32 = arith.constant 0 : i32
    %c0_i32_0 = arith.constant 0 : i32
    return %c0_i32, %1 : i32, i32
  }
  func.func @transform_1(%arg0: i32, %arg1: i32, %arg2: memref<1xf32, #tpu.memory_space<smem>>) -> (i32, i32) {
    %c1_i32 = arith.constant 1 : i32
    %0 = arith.muli %arg0, %c1_i32 : i32
    %1 = arith.addi %0, %arg1 : i32
    %c0_i32 = arith.constant 0 : i32
    %c0_i32_0 = arith.constant 0 : i32
    return %c0_i32, %1 : i32, i32
  }
  func.func @transform_2(%arg0: i32, %arg1: i32, %arg2: memref<1xf32, #tpu.memory_space<smem>>) -> (i32, i32, i32) {
    %c0_i32 = arith.constant 0 : i32
    %c0_i32_0 = arith.constant 0 : i32
    %c0_i32_1 = arith.constant 0 : i32
    return %arg0, %c0_i32, %c0_i32_0 : i32, i32, i32
  }
  func.func @transform_3(%arg0: i32, %arg1: i32, %arg2: memref<1xf32, #tpu.memory_space<smem>>) -> (i32, i32, i32) {
    %c0_i32 = arith.constant 0 : i32
    %c0_i32_0 = arith.constant 0 : i32
    %c0_i32_1 = arith.constant 0 : i32
    return %arg0, %c0_i32, %c0_i32_0 : i32, i32, i32
  }
  func.func @transform_4(%arg0: i32, %arg1: i32, %arg2: memref<1xf32, #tpu.memory_space<smem>>) -> (i32, i32, i32) {
    %c0_i32 = arith.constant 0 : i32
    %c0_i32_0 = arith.constant 0 : i32
    %c0_i32_1 = arith.constant 0 : i32
    return %arg0, %c0_i32, %c0_i32_0 : i32, i32, i32
  }
}

</mosaic_0001>

<bundles_post_ra>
// kernel: tpu_custom_call.1
= control target key start
LH: loop header
LB: loop body
LE: loop exit
PB: predicated region body
PF: predicated region fallthrough
CT: control target
= control target key end

     0   :  { %12 = vsyncpa [#allocation5], 0  ;;  %s515_s0 = inlined_call_operand.<no memory space> [shape: f32[1], index: 0, kind: input, shape index: {}]   ;;  %s516_s1 = inlined_call_operand.hbm [shape: f32[8,128], index: 1, kind: input, shape index: {}]   ;;  %s517_s2 = inlined_call_operand.hbm [shape: bf16[8,128], index: 2, kind: input, shape index: {}]   ;;  %s518_s3 = inlined_call_operand.hbm [shape: f32[1,8,8], index: 3, kind: output, shape index: {0}]   ;;  %s519_s4 = inlined_call_operand.hbm [shape: f32[1,8,8], index: 4, kind: output, shape index: {1}]   ;;  %s520_s5 = inlined_call_operand.hbm [shape: f32[1,8,128], index: 5, kind: output, shape index: {2}]  }
   0x1   :  { %13 = vsyncpa [#allocation8], 0 }
   0x2   :  { %14 = vsyncpa [#allocation6], 0 }
   0x3   :  { %15 = vsyncpa [#allocation11], 0  ;;  %s452_s18 = smov [#allocation4]   ;;  %s453_s20 = smov [#allocation7]  }
   0x4   :  { %s25_s19 = sshll.u32 %s452_s18, 4  ;;  %s38_s21 = sshll.u32 %s453_s20, 4  ;;  %s26_s19 = int_to_ptr.vmem [resolvable:$true] %s25_s19  ;;  %s39_s21 = int_to_ptr.vmem [resolvable:$true] %s38_s21 }
   0x5   :  { %s352_s22 = scalar_lea.vmem %s26_s19, 128  ;;  %p357_p1 = scmp.lt.s32.totalorder %s26_s19, %s26_s19 }
   0x6   :  { %p353_p0 = scmp.ne.s32.totalorder %s26_s19, %s352_s22  ;;  %p358_p2 = scmp.lt.s32.totalorder %s352_s22, %s352_s22 }
   0x8   :  { %p359_p3 = por %p358_p2, %p357_p1 }
   0xa   :  { %p360_p4 = pnand %p359_p3, %p353_p0 }
   0xc   :  { %363 = shalt.err (!%p360_p4)
}
   0xd   :  { %28 = dma.hbm_to_vmem [thread:$0]  %s516_s1, 128, %s26_s19, [#allocation5]  }
   0xe   :  { %s372_s25 = scalar_lea.vmem %s39_s21, 64  ;;  %p377_p6 = scmp.lt.s32.totalorder %s39_s21, %s39_s21 }
   0xf   :  { %p373_p5 = scmp.ne.s32.totalorder %s39_s21, %s372_s25  ;;  %p378_p7 = scmp.lt.s32.totalorder %s372_s25, %s372_s25 }
  0x11   :  { %p379_p8 = por %p378_p7, %p377_p6 }
  0x13   :  { %p380_p9 = pnand %p379_p8, %p373_p5 }
  0x15   :  { %383 = shalt.err (!%p380_p9)
}
  0x16   :  { %41 = dma.hbm_to_vmem [thread:$0]  %s517_s2, 64, %s39_s21, [#allocation8]  }
  0x17   :  { %444 = dma.done.wait [#allocation5], 128  }
  0x18   :  { %445 = vsyncadd [#allocation5], 4294967168  ;;  %v60_v0 = vstv %s515_s0 }
  0x19   :  { %446 = dma.done.wait [#allocation8], 64  }
  0x1a   :  { %447 = vsyncadd [#allocation8], 4294967232  ;;  %338 = vrcp.f32 %v60_v0  ;;  %v454_v1 = vmov 0.0   ;;  %vm455_vm0 = vmmov 0   ;;  %v63_v3 = vld [vmem:[#allocation4] sm:$0xff]  ;;  %vm55_vm1 = vcmask 64512  }
  0x1b   :  { %311 = vmatprep.subr.bf16.mxu1 %v454_v1  ;;  %305 = vmatprep.subr.bf16.mxu0 %v454_v1  ;;  %v66_v13 = vld [vmem:[#allocation7] sm:$0xf]  ;;  %57 = vst.msk [vmem:[#allocation10] sm:$0xff] %vm55_vm1, %v454_v1  ;;  %56 = vst.msk [vmem:[#allocation9] sm:$0xff] %vm55_vm1, %v454_v1  ;;  %s456_s0 = smov [#allocation10]   ;;  %s457_s30 = smov [#allocation12]  }
  0x1c   :  { %313 = vmatprep.mubr.msk.bf16.mxu1 %vm455_vm0, %v454_v1  ;;  %307 = vmatprep.mubr.msk.bf16.mxu0 %vm455_vm0, %v454_v1  ;;  %v67_v16 = vunpack.c.l.bf16 %v66_v13  ;;  %s270_s2 = sshll.u32 %s456_s0, 4  ;;  %s280_s6 = sshll.u32 %s457_s30, 4  ;;  %s271_s2 = int_to_ptr.vmem [resolvable:$true] %s270_s2  ;;  %s281_s6 = int_to_ptr.vmem [resolvable:$true] %s280_s6 }
  0x1d   :  { %s384_s7 = scalar_lea.vmem %s271_s2, 128  ;;  %p389_p11 = scmp.lt.s32.totalorder %s271_s2, %s271_s2 }
  0x1e   :  { %p385_p10 = scmp.ne.s32.totalorder %s271_s2, %s384_s7  ;;  %p390_p12 = scmp.lt.s32.totalorder %s384_s7, %s384_s7 }
  0x20   :  { %p391_p13 = por %p390_p12, %p389_p11 }
  0x22   :  { %v211_v28 = vld [vmem:[#allocation10] sm:$0xff]  ;;  %p392_p0 = pnand %p391_p13, %p385_p10 }
  0x27   :  { %v339_v2 = vpop.eup %338 }
  0x28   :  { %329 = vpush %v339_v2 }
  0x59   :  { %s330_s1 = spop %329 }
  0x5a   :  { %v64_v4 = vstv %s330_s1 }
  0x5b   :  { %v65_v5 = vmul.f32 %v64_v4, %v63_v3 }
  0x5d   :  { %v71_v6 = vand.u32 2147483647, %v65_v5  ;;  %v82_v7 = vpack.c.bf16 %v65_v5, %v65_v5  ;;  %v68_v17 = vmax.f32 %v65_v5, 0.0  ;;  %v69_v18 = vmul.f32 %v67_v16, %v65_v5 }
  0x5f   :  { %v72_v8 = vsub.f32 0.0, %v71_v6  ;;  %312 = vmatpush3.bf16.xpose.msra.mxu1 %v82_v7  ;;  %v83_v9 = vunpack.c.l.bf16 %v82_v7  ;;  %v70_v20 = vsub.f32 %v68_v17, %v69_v18 }
  0x60   :  { %323 = vmatprep.subr.bf16.mxu1 %v454_v1 }
  0x61   :  { %v73_v10 = vmul.f32 1.442695, %v72_v8  ;;  %v84_v11 = vsub.f32 %v65_v5, %v83_v9 }
  0x63   :  { %340 = vpow2.f32 %v73_v10  ;;  %v85_v12 = vpack.c.bf16 %v84_v11, %v84_v11 }
  0x65   :  { %306 = vmatpush3.bf16.xpose.msra.mxu0 %v85_v12 }
  0x66   :  { %314 = vmatmul.mubr.bf16.vlgmr.msra.gmra.mxu1 %v82_v7  ;;  %317 = vmatprep.subr.bf16.mxu0 %v454_v1 }
  0x67   :  { %324 = vmatpush3.bf16.xpose.msra.mxu1 %v66_v13  ;;  %325 = vmatprep.mubr.msk.bf16.mxu1 %vm455_vm0, %v454_v1 }
  0x6c   :  { %308 = vmatmul.mubr.bf16.vlgmr.msra.gmra.mxu0 %v82_v7 }
  0x6d   :  { %318 = vmatpush3.bf16.xpose.msra.mxu0 %v82_v7  ;;  %319 = vmatprep.mubr.msk.bf16.mxu0 %vm455_vm0, %v454_v1 }
  0x6e   :  { %326 = vmatmul.mubr.bf16.vlgmr.msra.gmra.mxu1 %v66_v13 }
  0x70   :  { %v341_v14 = vpop.eup %340 }
  0x71   :  { %v75_v15 = vadd.f32 1.0, %v341_v14 }
  0x73   :  { %342 = vlog2.f32 %v75_v15 }
  0x74   :  { %320 = vmatmul.mubr.bf16.vlgmr.msra.gmra.mxu0 %v85_v12 }
  0x80   :  { %v343_v19 = vpop.eup %342 }
  0x81   :  { %v77_v21 = vmul.f32 0.6931472, %v343_v19 }
  0x83   :  { %v78_v22 = vadd.f32 %v77_v21, %v70_v20 }
  0x85   :  { %81 = vst [vmem:[#allocation12] sm:$0xff] %v78_v22 }
 0x126   :  { %v161_v23 = vpop.f32.mrf.mxu1 }
 0x128   :  { %v315_v24 = vpop.f32.mrf.mxu1 }
 0x12a   :  { %v164_v25 = vpop.f32.mrf.mxu1 }
 0x12c   :  { %v121_v26 = vpop.f32.mrf.mxu0  ;;  %v316_v27 = vpop.f32.mrf.mxu1 }
 0x12e   :  { %v309_v29 = vpop.f32.mrf.mxu0  ;;  %v246_v30 = vpop.f32.mrf.mxu1 }
 0x12f   :  { %v252_v31 = vadd.f32 %v246_v30, %v211_v28 }
 0x130   :  { %v124_v32 = vpop.f32.mrf.mxu0  ;;  %v327_v33 = vpop.f32.mrf.mxu1 }
 0x131   :  { %253 = vst.msk [vmem:[#allocation10] sm:$0xff] %vm55_vm1, %v252_v31 }
 0x132   :  { %v310_v34 = vpop.f32.mrf.mxu0  ;;  %v249_v35 = vpop.f32.mrf.mxu1 }
 0x133   :  { %395 = shalt.err (!%p392_p0)
}
 0x134   :  { %273 = dma.vmem_to_hbm [thread:$0]  %s271_s2, 128, %s519_s4, [#allocation11]   ;;  %v162_v36 = vadd.f32 %v161_v23, %v121_v26 }
 0x135   :  { %s404_s10 = scalar_lea.vmem %s281_s6, 128  ;;  %p409_p2 = scmp.lt.s32.totalorder %s281_s6, %s281_s6 }
 0x136   :  { %p405_p1 = scmp.ne.s32.totalorder %s281_s6, %s404_s10  ;;  %p410_p3 = scmp.lt.s32.totalorder %s404_s10, %s404_s10 }
 0x138   :  { %p411_p4 = por %p410_p3, %p409_p2 }
 0x13a   :  { %p412_p5 = pnand %p411_p4, %p405_p1 }
 0x13c   :  { %415 = shalt.err (!%p412_p5)
}
 0x13d   :  { %283 = dma.vmem_to_hbm [thread:$0]  %s281_s6, 128, %s520_s5, [#allocation11]   ;;  %v86_v37 = vld [vmem:[#allocation9] sm:$0xff]  ;;  %v201_v38 = vpop.f32.mrf.mxu0  ;;  %v328_v39 = vpop.f32.mrf.mxu1 }
 0x13e   :  { %s458_s13 = smov [#allocation9]   ;;  %v207_v40 = vadd.f32 %v201_v38, %v162_v36 }
 0x13f   :  { %s260_s14 = sshll.u32 %s458_s13, 4  ;;  %v321_v41 = vpop.f32.mrf.mxu0  ;;  %s261_s14 = int_to_ptr.vmem [resolvable:$true] %s260_s14 }
 0x140   :  { %v208_v42 = vadd.f32 %v207_v40, %v86_v37  ;;  %s424_s4 = scalar_lea.vmem %s261_s14, 128  ;;  %p429_p7 = scmp.lt.s32.totalorder %s261_s14, %s261_s14 }
 0x141   :  { %v204_v43 = vpop.f32.mrf.mxu0  ;;  %p425_p6 = scmp.ne.s32.totalorder %s261_s14, %s424_s4  ;;  %p430_p8 = scmp.lt.s32.totalorder %s424_s4, %s424_s4 }
 0x142   :  { %210 = vst.msk [vmem:[#allocation9] sm:$0xff] %vm55_vm1, %v208_v42 }
 0x143   :  { %v322_v44 = vpop.f32.mrf.mxu0  ;;  %p431_p9 = por %p430_p8, %p429_p7 }
 0x145   :  { %p432_p10 = pnand %p431_p9, %p425_p6 }
 0x147   :  { %435 = shalt.err (!%p432_p10)
}
 0x148   :  { %263 = dma.vmem_to_hbm [thread:$0]  %s261_s14, 128, %s518_s3, [#allocation6]  }
 0x149   :  { %448 = dma.done.wait [#allocation6], 128  }
 0x14a   :  { %449 = vsyncadd [#allocation6], 4294967168 }
 0x14b   :  { %450 = dma.done.wait [#allocation11], 256  }
 0x14c   :  { %451 = vsyncadd [#allocation11], 4294967040 }
 0x14d   :  { %293 = vsyncpa [#allocation5], 1 }
 0x14e   :  { %294 = vsyncpa [#allocation8], 1 }
 0x14f   :  { %295 = vsyncpa [#allocation6], 1 }
 0x150   :  { %296 = vsyncpa [#allocation11], 1 }

</bundles_post_ra>
